<compile_context>
chip_gen: v6e
topology: v6e:2x2x1
jax: 0.10.0
libtpu: 0.0.40
codegen_flags: <defaults>
</compile_context>

<pallas_src>
import functools
import math

import jax
import jax.numpy as jnp
import numpy as np
from jax.experimental import pallas as pl
from jax.experimental.pallas import tpu as pltpu


# ---------------------------------------------------------------------------
# Kernel: fused sinusoidal embedding -> Linear -> SiLU -> Linear
# ---------------------------------------------------------------------------
def _fused_time_mlp_kernel(t_ref, tab_ref, w1_ref, b1_ref, w2_ref, b2_ref,
                           out_ref):
    # t_ref:   (tb, 1)  f32
    # tab_ref: (2, dim) f32  -- row 0: tiled frequencies, row 1: sin selector
    # w1_ref:  (dim, h1) bf16 ; b1_ref: (1, h1) f32
    # w2_ref:  (h1, h2)  bf16 ; b2_ref: (1, h2) f32
    # out_ref: (tb, h2)  (consumer dtype, bf16 by default)
    freq = tab_ref[0:1, :]                                   # (1, dim)
    sel = tab_ref[1:2, :]                                    # (1, dim) 1=sin half
    args = t_ref[...] * freq                                 # (tb, dim) f32
    # Exact sin/cos blend (bit-exact vs concat([sin, cos]); no phase-shift
    # rounding error, no XLU lane concat).
    emb = sel * jnp.sin(args) + (1.0 - sel) * jnp.cos(args)  # (tb, dim) f32

    # bf16 MXU operands, f32 accumulation.
    h = jnp.dot(emb.astype(jnp.bfloat16), w1_ref[...],
                preferred_element_type=jnp.float32)           # (tb, h1) f32
    h = h + b1_ref[...]
    h = h * jax.nn.sigmoid(h)                                 # SiLU (EUP)

    out = jnp.dot(h.astype(jnp.bfloat16), w2_ref[...],
                  preferred_element_type=jnp.float32)         # (tb, h2) f32
    out = out + b2_ref[...]
    out_ref[...] = out.astype(out_ref.dtype)                  # lane-dense store


# ---------------------------------------------------------------------------
# Host-side helpers
# ---------------------------------------------------------------------------
@functools.lru_cache(maxsize=None)
def _freq_sel_table(dim: int):
    """Cached (2, dim) f32 constant table.

    Row 0: frequencies, canonical DDPM convention
           freqs[j] = exp(-j * ln(10000) / (half - 1)), tiled twice.
    Row 1: selector -- 1.0 for the sin half, 0.0 for the cos half.
    Built once per `dim` from numpy (no per-call jnp op launches / re-uploads).
    """
    half = dim // 2
    scale = math.log(10000.0) / (half - 1) if half > 1 else 0.0
    freqs = np.exp(-scale * np.arange(half, dtype=np.float32))
    tab = np.zeros((2, dim), dtype=np.float32)
    tab[0, :half] = freqs
    tab[0, half:] = freqs
    tab[1, :half] = 1.0
    return jnp.asarray(tab)


def _pick_row_tile(b: int, block_rows=None, *, megacore_split: bool = False,
                   max_rows: int = 512) -> int:
    """Row-tile selection per the performance review.

    * small B (<= max_rows): single block (grid of 1) -- gridding tiny batches
      is pure per-step overhead and leaves the MXU >90% idle;
    * large B: largest multiple-of-8 divisor up to 512 rows;
    * megacore_split (v7x): ensure >= 2 parallel programs when B allows it.
    """
    if block_rows is not None:
        if b % block_rows != 0:
            raise ValueError("block_rows must divide the batch")
        if block_rows != b and block_rows % 8 != 0:
            raise ValueError("block_rows with grid > 1 must be a multiple of 8")
        return block_rows
    if megacore_split and b >= 16 and (b // 2) % 8 == 0 and (b // 2) <= max_rows:
        return b // 2                      # >= 2 parallel programs for 2 TCs
    if b <= max_rows:
        return b                           # single block: no per-step overhead
    for t in (512, 256, 128, 64, 32, 16, 8):
        if b % t == 0:
            return t
    return b                               # ragged large batch: one block


# ---------------------------------------------------------------------------
# Wrapper
# ---------------------------------------------------------------------------
def time_mlp(time: jax.Array, dim: int, w1: jax.Array, b1: jax.Array,
             w2: jax.Array, b2: jax.Array, *,
             block_rows: int | None = None,
             megacore_split: bool = False,
             out_dtype=jnp.bfloat16,
             vmem_limit_bytes: int | None = None) -> jax.Array:
    """Fused sinusoidal timestep embedding + time-MLP (Linear -> SiLU -> Linear).

    time: (B,), w1: (dim, H1), b1: (H1,), w2: (H1, H2), b2: (H2,) -> (B, H2).
    Weights are fed to the MXU in bf16; accumulation is f32.
    """
    assert dim % 2 == 0, "dim must be even"
    b = time.shape[0]
    h1, h2 = w1.shape[1], w2.shape[1]
    assert w1.shape[0] == dim and w2.shape[0] == h1

    t2d = time.astype(jnp.float32).reshape(b, 1)
    tab = _freq_sel_table(dim)                              # (2, dim), cached
    w1_bf = w1.astype(jnp.bfloat16)                         # keep MXU-native dtype
    w2_bf = w2.astype(jnp.bfloat16)
    b1_2d = b1.astype(jnp.float32).reshape(1, h1)
    b2_2d = b2.astype(jnp.float32).reshape(1, h2)

    tb = _pick_row_tile(b, block_rows, megacore_split=megacore_split)
    grid = (b // tb,)
    const = pl.Buffered(1)                                  # no double-buffering
    cp_kwargs = dict(dimension_semantics=("parallel",))
    if vmem_limit_bytes is not None:
        cp_kwargs["vmem_limit_bytes"] = vmem_limit_bytes

    return pl.pallas_call(
        _fused_time_mlp_kernel,
        out_shape=jax.ShapeDtypeStruct((b, h2), out_dtype),
        grid_spec=pltpu.PrefetchScalarGridSpec(
            num_scalar_prefetch=0,
            grid=grid,
            in_specs=[
                pl.BlockSpec((tb, 1), lambda i: (i, 0)),                     # t
                pl.BlockSpec((2, dim), lambda i: (0, 0), pipeline_mode=const),   # freq/sel
                pl.BlockSpec((dim, h1), lambda i: (0, 0), pipeline_mode=const),  # W1
                pl.BlockSpec((1, h1), lambda i: (0, 0), pipeline_mode=const),    # b1
                pl.BlockSpec((h1, h2), lambda i: (0, 0), pipeline_mode=const),   # W2
                pl.BlockSpec((1, h2), lambda i: (0, 0), pipeline_mode=const),    # b2
            ],
            out_specs=pl.BlockSpec((tb, h2), lambda i: (i, 0)),
        ),
        compiler_params=pltpu.CompilerParams(**cp_kwargs),
    )(t2d, tab, w1_bf, b1_2d, w2_bf, b2_2d)


# ---------------------------------------------------------------------------
# Pure-JAX references (standalone embedding kept ONLY as a reference; the
# production path uses the fused kernel above)
# ---------------------------------------------------------------------------
def _embedding_reference(time: jax.Array, dim: int) -> jax.Array:
    half = dim // 2
    scale = math.log(10000.0) / (half - 1)
    freqs = jnp.exp(-scale * jnp.arange(half, dtype=jnp.float32))
    args = time[:, None].astype(jnp.float32) * freqs[None, :]
    return jnp.concatenate([jnp.sin(args), jnp.cos(args)], axis=-1)


def _mlp_reference(time, dim, w1, b1, w2, b2):
    emb = _embedding_reference(time, dim)
    h = emb @ w1.astype(jnp.float32) + b1.astype(jnp.float32)
    h = h * jax.nn.sigmoid(h)
    return h @ w2.astype(jnp.float32) + b2.astype(jnp.float32)


if __name__ == "__main__":
    key = jax.random.PRNGKey(0)
    k_t, k_w1, k_b1, k_w2, k_b2 = jax.random.split(key, 5)

    batch = 16      # small batch -> single block, grid of 1 (per review)
    dim = 128       # lane-dense embedding width
    hidden = 128    # time-MLP width

    time = jax.random.uniform(k_t, (batch,), minval=0.0, maxval=1000.0,
                              dtype=jnp.float32)
    w1 = jax.random.normal(k_w1, (dim, hidden), jnp.float32) * 0.05
    b1 = jax.random.normal(k_b1, (hidden,), jnp.float32) * 0.05
    w2 = jax.random.normal(k_w2, (hidden, hidden), jnp.float32) * 0.05
    b2 = jax.random.normal(k_b2, (hidden,), jnp.float32) * 0.05

    out_ref = _mlp_reference(time, dim, w1, b1, w2, b2)

    # 1) Default path: single block (grid of 1), bf16 MXU operands, bf16 out.
    out = jax.block_until_ready(time_mlp(time, dim, w1, b1, w2, b2))
    assert out.shape == (batch, hidden)
    assert out.dtype == jnp.bfloat16
    assert jnp.allclose(out.astype(jnp.float32), out_ref, atol=2e-2, rtol=2e-2), \
        "fused time-MLP (single block) mismatch vs reference"

    # 2) Megacore-split path (v7x-style: two parallel programs of 8 rows).
    out2 = jax.block_until_ready(
        time_mlp(time, dim, w1, b1, w2, b2, megacore_split=True))
    assert jnp.allclose(out2.astype(jnp.float32), out_ref, atol=2e-2, rtol=2e-2), \
        "fused time-MLP (megacore split) mismatch vs reference"

    print("KERNEL_OK")
</pallas_src>

<mosaic_0001>
module attributes {stable_mosaic.version = 11 : i64} {
  func.func @_fused_time_mlp_kernel(%arg0: i32, %arg1: memref<16x1xf32, #tpu.memory_space<vmem>>, %arg2: memref<2x128xf32, #tpu.memory_space<vmem>>, %arg3: memref<128x128xbf16, #tpu.memory_space<vmem>>, %arg4: memref<1x128xf32, #tpu.memory_space<vmem>>, %arg5: memref<128x128xbf16, #tpu.memory_space<vmem>>, %arg6: memref<1x128xf32, #tpu.memory_space<vmem>>, %arg7: memref<16x128xbf16, #tpu.memory_space<vmem>>) attributes {dimension_semantics = [#tpu.dimension_semantics<parallel>], iteration_bounds = array<i64: 1>, scalar_prefetch = 0 : i64, scratch_operands = 0 : i64, tpu.core_type = #tpu.core_type<tc>, window_params = [{transform_indices = @transform_0, window_bounds = array<i64: 16, 1>}, {pipeline_mode = #tpu.pipeline_mode<synchronous>, transform_indices = @transform_1, window_bounds = array<i64: 2, 128>}, {pipeline_mode = #tpu.pipeline_mode<synchronous>, transform_indices = @transform_2, window_bounds = array<i64: 128, 128>}, {pipeline_mode = #tpu.pipeline_mode<synchronous>, transform_indices = @transform_3, window_bounds = array<i64: 1, 128>}, {pipeline_mode = #tpu.pipeline_mode<synchronous>, transform_indices = @transform_4, window_bounds = array<i64: 128, 128>}, {pipeline_mode = #tpu.pipeline_mode<synchronous>, transform_indices = @transform_5, window_bounds = array<i64: 1, 128>}, {transform_indices = @transform_6, window_bounds = array<i64: 16, 128>}]} {
    %c0 = arith.constant 0 : index
    %c0_0 = arith.constant 0 : index
    %0 = vector.load %arg2[%c0, %c0_0] : memref<2x128xf32, #tpu.memory_space<vmem>>, vector<1x128xf32>
    %c1 = arith.constant 1 : index
    %c0_1 = arith.constant 0 : index
    %1 = vector.load %arg2[%c1, %c0_1] : memref<2x128xf32, #tpu.memory_space<vmem>>, vector<1x128xf32>
    %c0_2 = arith.constant 0 : index
    %c0_3 = arith.constant 0 : index
    %2 = vector.load %arg1[%c0_2, %c0_3] : memref<16x1xf32, #tpu.memory_space<vmem>>, vector<16x1xf32>
    %3 = vector.broadcast %2 : vector<16x1xf32> to vector<16x128xf32>
    %4 = vector.broadcast %0 : vector<1x128xf32> to vector<16x128xf32>
    %5 = arith.mulf %3, %4 : vector<16x128xf32>
    %6 = math.sin %5 : vector<16x128xf32>
    %7 = vector.broadcast %1 : vector<1x128xf32> to vector<16x128xf32>
    %8 = arith.mulf %7, %6 : vector<16x128xf32>
    %cst = arith.constant 1.000000e+00 : f32
    %9 = vector.broadcast %cst : f32 to vector<1x128xf32>
    %10 = arith.subf %9, %1 : vector<1x128xf32>
    %11 = math.cos %5 : vector<16x128xf32>
    %12 = vector.broadcast %10 : vector<1x128xf32> to vector<16x128xf32>
    %13 = arith.mulf %12, %11 : vector<16x128xf32>
    %14 = arith.addf %8, %13 : vector<16x128xf32>
    %15 = arith.truncf %14 : vector<16x128xf32> to vector<16x128xbf16>
    %c0_4 = arith.constant 0 : index
    %c0_5 = arith.constant 0 : index
    %16 = vector.load %arg3[%c0_4, %c0_5] : memref<128x128xbf16, #tpu.memory_space<vmem>>, vector<128x128xbf16>
    %cst_6 = arith.constant dense<0.000000e+00> : vector<16x128xf32>
    %17 = tpu.matmul %15, %16, %cst_6 {dimension_numbers = #tpu.dot_dimension_numbers<[1], [0], [0], [1], [0, 0, 1, 1], [], []>} : vector<16x128xbf16>, vector<128x128xbf16>, vector<16x128xf32> -> vector<16x128xf32>
    %c0_7 = arith.constant 0 : index
    %c0_8 = arith.constant 0 : index
    %18 = vector.load %arg4[%c0_7, %c0_8] : memref<1x128xf32, #tpu.memory_space<vmem>>, vector<1x128xf32>
    %19 = vector.broadcast %18 : vector<1x128xf32> to vector<16x128xf32>
    %20 = arith.addf %17, %19 : vector<16x128xf32>
    %21 = arith.negf %20 : vector<16x128xf32>
    %22 = math.exp %21 : vector<16x128xf32>
    %cst_9 = arith.constant 1.000000e+00 : f32
    %23 = vector.broadcast %cst_9 : f32 to vector<16x128xf32>
    %24 = arith.addf %23, %22 : vector<16x128xf32>
    %25 = arith.divf %23, %24 : vector<16x128xf32>
    %26 = arith.mulf %20, %25 : vector<16x128xf32>
    %27 = arith.truncf %26 : vector<16x128xf32> to vector<16x128xbf16>
    %c0_10 = arith.constant 0 : index
    %c0_11 = arith.constant 0 : index
    %28 = vector.load %arg5[%c0_10, %c0_11] : memref<128x128xbf16, #tpu.memory_space<vmem>>, vector<128x128xbf16>
    %cst_12 = arith.constant dense<0.000000e+00> : vector<16x128xf32>
    %29 = tpu.matmul %27, %28, %cst_12 {dimension_numbers = #tpu.dot_dimension_numbers<[1], [0], [0], [1], [0, 0, 1, 1], [], []>} : vector<16x128xbf16>, vector<128x128xbf16>, vector<16x128xf32> -> vector<16x128xf32>
    %c0_13 = arith.constant 0 : index
    %c0_14 = arith.constant 0 : index
    %30 = vector.load %arg6[%c0_13, %c0_14] : memref<1x128xf32, #tpu.memory_space<vmem>>, vector<1x128xf32>
    %31 = vector.broadcast %30 : vector<1x128xf32> to vector<16x128xf32>
    %32 = arith.addf %29, %31 : vector<16x128xf32>
    %33 = arith.truncf %32 : vector<16x128xf32> to vector<16x128xbf16>
    %c0_15 = arith.constant 0 : index
    %c0_16 = arith.constant 0 : index
    %34 = vector.load %arg7[%c0_15, %c0_16] : memref<16x128xbf16, #tpu.memory_space<vmem>>, vector<16x128xbf16>
    tpu.vector_store %arg7[%c0_15, %c0_16], %33 {strides = array<i32>} : memref<16x128xbf16, #tpu.memory_space<vmem>>, vector<16x128xbf16>,
    return
  }
  func.func @transform_0(%arg0: i32) -> (i32, i32) {
    %c0_i32 = arith.constant 0 : i32
    %c0_i32_0 = arith.constant 0 : i32
    return %arg0, %c0_i32 : i32, i32
  }
  func.func @transform_1(%arg0: i32) -> (i32, i32) {
    %c0_i32 = arith.constant 0 : i32
    %c0_i32_0 = arith.constant 0 : i32
    %c0_i32_1 = arith.constant 0 : i32
    return %c0_i32, %c0_i32_0 : i32, i32
  }
  func.func @transform_2(%arg0: i32) -> (i32, i32) {
    %c0_i32 = arith.constant 0 : i32
    %c0_i32_0 = arith.constant 0 : i32
    %c0_i32_1 = arith.constant 0 : i32
    return %c0_i32, %c0_i32_0 : i32, i32
  }
  func.func @transform_3(%arg0: i32) -> (i32, i32) {
    %c0_i32 = arith.constant 0 : i32
    %c0_i32_0 = arith.constant 0 : i32
    %c0_i32_1 = arith.constant 0 : i32
    return %c0_i32, %c0_i32_0 : i32, i32
  }
  func.func @transform_4(%arg0: i32) -> (i32, i32) {
    %c0_i32 = arith.constant 0 : i32
    %c0_i32_0 = arith.constant 0 : i32
    %c0_i32_1 = arith.constant 0 : i32
    return %c0_i32, %c0_i32_0 : i32, i32
  }
  func.func @transform_5(%arg0: i32) -> (i32, i32) {
    %c0_i32 = arith.constant 0 : i32
    %c0_i32_0 = arith.constant 0 : i32
    %c0_i32_1 = arith.constant 0 : i32
    return %c0_i32, %c0_i32_0 : i32, i32
  }
  func.func @transform_6(%arg0: i32) -> (i32, i32) {
    %c0_i32 = arith.constant 0 : i32
    %c0_i32_0 = arith.constant 0 : i32
    return %arg0, %c0_i32 : i32, i32
  }
}

</mosaic_0001>

<bundles_post_ra>
// kernel: tpu_custom_call.1
= control target key start
LH: loop header
LB: loop body
LE: loop exit
PB: predicated region body
PF: predicated region fallthrough
CT: control target
= control target key end

     0   :  { %11 = vsyncpa [#allocation3], 0  ;;  %s1162_s0 = inlined_call_operand.vmem [shape: f32[16,1], index: 0, kind: input, shape index: {}]   ;;  %s1163_s1 = inlined_call_operand.vmem [shape: f32[2,128], index: 1, kind: input, shape index: {}]   ;;  %s1164_s2 = inlined_call_operand.hbm [shape: bf16[128,128], index: 2, kind: input, shape index: {}]   ;;  %s1165_s3 = inlined_call_operand.vmem [shape: f32[1,128], index: 3, kind: input, shape index: {}]   ;;  %s1166_s4 = inlined_call_operand.hbm [shape: bf16[128,128], index: 4, kind: input, shape index: {}]   ;;  %s1167_s5 = inlined_call_operand.vmem [shape: f32[1,128], index: 5, kind: input, shape index: {}]   ;;  %s1168_s6 = inlined_call_operand.hbm [shape: bf16[16,128], index: 6, kind: output, shape index: {}]  }
   0x1   :  { %12 = vsyncpa [#allocation6], 0 }
   0x2   :  { %13 = vsyncpa [#allocation4], 0  ;;  %s995_s21 = smov [#allocation2]  }
   0x3   :  { %s23_s22 = sshll.u32 %s995_s21, 4  ;;  %s24_s22 = int_to_ptr.vmem [resolvable:$true] %s23_s22 }
   0x4   :  { %s937_s23 = scalar_lea.vmem %s24_s22, 1024  ;;  %p942_p1 = scmp.lt.s32.totalorder %s24_s22, %s24_s22 }
   0x5   :  { %p938_p0 = scmp.ne.s32.totalorder %s24_s22, %s937_s23  ;;  %p943_p2 = scmp.lt.s32.totalorder %s937_s23, %s937_s23 }
   0x7   :  { %p944_p3 = por %p943_p2, %p942_p1 }
   0x9   :  { %p945_p4 = pnand %p944_p3, %p938_p0 }
   0xb   :  { %948 = shalt.err (!%p945_p4)
}
   0xc   :  { %s996_s24 = smov 64   ;;  %s997_s25 = smov 4  }
   0xd   :  { %29 = dma.hbm_to_vmem [thread:$0]  %s1164_s2, 1024, %s24_s22, [#allocation3], %s996_s24, %s996_s24, %s997_s25  }
   0xe   :  { %s998_s28 = smov [#allocation5]  }
   0xf   :  { %s37_s29 = sshll.u32 %s998_s28, 4  ;;  %s38_s29 = int_to_ptr.vmem [resolvable:$true] %s37_s29 }
  0x10   :  { %s957_s30 = scalar_lea.vmem %s38_s29, 1024  ;;  %p962_p6 = scmp.lt.s32.totalorder %s38_s29, %s38_s29 }
  0x11   :  { %p958_p5 = scmp.ne.s32.totalorder %s38_s29, %s957_s30  ;;  %p963_p7 = scmp.lt.s32.totalorder %s957_s30, %s957_s30 }
  0x13   :  { %p964_p8 = por %p963_p7, %p962_p6 }
  0x15   :  { %p965_p9 = pnand %p964_p8, %p958_p5 }
  0x17   :  { %968 = shalt.err (!%p965_p9)
}
  0x18   :  { %43 = dma.hbm_to_vmem [thread:$0]  %s1166_s4, 1024, %s38_s29, [#allocation6], %s996_s24, %s996_s24, %s997_s25  }
  0x19   :  { %989 = dma.done.wait [#allocation3], 1024  }
  0x1a   :  { %990 = vsyncadd [#allocation3], 4294966272 }
  0x1b   :  { %991 = dma.done.wait [#allocation6], 1024  }
  0x1c   :  { %992 = vsyncadd [#allocation6], 4294966272  ;;  %v999_v0 = vmov 0   ;;  %v55_v1 = vld [vmem:[%s1162_s0] sm:$0xff]  ;;  %v56_v2 = vld [vmem:[%s1162_s0 + $0x8] sm:$0xff]  ;;  %v1000_v4 = vmov 0.0  }
  0x1d   :  { %896 = vset.pattern.permute.xlu0 %v999_v0  ;;  %v897_v3 = vld [vmem:[#allocation2 + $0x38] sm:$0xff]   ;;  %834 = vmatprep.subr.bf16.mxu0 %v1000_v4  ;;  %v898_v5 = vld [vmem:[#allocation2 + $0x30] sm:$0xff]   ;;  %v899_v6 = vld [vmem:[#allocation2 + $0x28] sm:$0xff]   ;;  %vm1001_vm0 = vmmov 0   ;;  %v1002_v33 = vmov 683565275  }
  0x1e   :  { %59 = vperm.xlu0 %896, %v55_v1   ;;  %854 = vmatprep.subr.bf16.mxu1 %v1000_v4  ;;  %v900_v7 = vld [vmem:[#allocation2 + $0x20] sm:$0xff]   ;;  %v901_v8 = vld [vmem:[#allocation2 + $0x18] sm:$0xff]   ;;  %v902_v9 = vld [vmem:[#allocation2 + $0x10] sm:$0xff]   ;;  %v1003_v37 = vmov 2475754826   ;;  %s1008_s16 = smov [#allocation7]  }
  0x1f   :  { %835 = vmatpush3.bf16.msra.mxu0 %v897_v3  ;;  %850 = vmatprep.mubr.msk.bf16.mxu0 %vm1001_vm0, %v1000_v4  ;;  %v903_v10 = vld [vmem:[#allocation2 + $0x8] sm:$0xff]   ;;  %v904_v11 = vld [vmem:[#allocation2] sm:$0xff]   ;;  %v1004_v39 = vmov 2131351028   ;;  %v1005_v41 = vmov 2102212464  }
  0x20   :  { %836 = vmatprep.subr.bf16.mxu0 %v1000_v4  ;;  %870 = vmatprep.mubr.msk.bf16.mxu1 %vm1001_vm0, %v1000_v4  ;;  %v770_v12 = vld [vmem:[%s1163_s1] ss:$0 sm:$0xff]  ;;  %v1006_v43 = vmov 920167782   ;;  %v1007_v50 = vmov 1326507024  }
  0x21   :  { %s757_s17 = sshll.u32 %s1008_s16, 4  ;;  %s758_s17 = int_to_ptr.vmem [resolvable:$true] %s757_s17 }
  0x22   :  { %64 = vperm.xlu0 %896, %v56_v2   ;;  %s969_s18 = scalar_lea.vmem %s758_s17, 128  ;;  %p974_p11 = scmp.lt.s32.totalorder %s758_s17, %s758_s17 }
  0x23   :  { %837 = vmatpush3.bf16.msra.mxu0 %v898_v5  ;;  %p970_p10 = scmp.ne.s32.totalorder %s758_s17, %s969_s18  ;;  %p975_p12 = scmp.lt.s32.totalorder %s969_s18, %s969_s18 }
  0x24   :  { %838 = vmatprep.subr.bf16.mxu0 %v1000_v4 }
  0x25   :  { %p976_p13 = por %p975_p12, %p974_p11 }
  0x27   :  { %839 = vmatpush3.bf16.msra.mxu0 %v899_v6  ;;  %p977_p0 = pnand %p976_p13, %p970_p10 }
  0x28   :  { %840 = vmatprep.subr.bf16.mxu0 %v1000_v4 }
  0x2b   :  { %841 = vmatpush3.bf16.msra.mxu0 %v900_v7 }
  0x2c   :  { %842 = vmatprep.subr.bf16.mxu0 %v1000_v4 }
  0x2f   :  { %843 = vmatpush3.bf16.msra.mxu0 %v901_v8 }
  0x30   :  { %844 = vmatprep.subr.bf16.mxu0 %v1000_v4 }
  0x33   :  { %845 = vmatpush3.bf16.msra.mxu0 %v902_v9 }
  0x34   :  { %846 = vmatprep.subr.bf16.mxu0 %v1000_v4 }
  0x37   :  { %847 = vmatpush3.bf16.msra.mxu0 %v903_v10 }
  0x38   :  { %848 = vmatprep.subr.bf16.mxu0 %v1000_v4 }
  0x3b   :  { %849 = vmatpush3.bf16.msra.mxu0 %v904_v11 }
  0x99   :  { %v60_v13 = vpop.permute.xlu0 %59 }
  0x9a   :  { %v1076_v14 = vmul.f32 %v770_v12, %v60_v13 }
  0x9c   :  { %v73_v15 = vand.u32 2147483647, %v1076_v14  ;;  %v76_v16 = vand.u32 2139095040, %v1076_v14  ;;  %vm75_vm15 = vcmp.lt.s32.totalorder %v1076_v14, 0 }
  0x9d   :  { %v65_v17 = vpop.permute.xlu0 %64 }
  0x9e   :  { %v77_v18 = vshrl.u32 %v76_v16, 23  ;;  %v1080_v19 = vmul.f32 %v770_v12, %v65_v17  ;;  %v80_v20 = vand.u32 8388607, %v73_v15  ;;  %vm74_vm0 = vcmp.le.f32.partialorder %v73_v15, 0.7853982 }
  0xa0   :  { %v771_v21 = vadd.s32 4294967169, %v77_v18  ;;  %v180_v22 = vand.u32 2139095040, %v1080_v19  ;;  %v81_v24 = vor.u32 8388608, %v80_v20  ;;  %v177_v26 = vand.u32 2147483647, %v1080_v19 }
  0xa2   :  { %v83_v23 = vadd.s32 1, %v771_v21  ;;  %v181_v25 = vshrl.u32 %v180_v22, 23  ;;  %v1086_v31 = vshll.u32 %v81_v24, 8  ;;  %v184_v35 = vand.u32 8388607, %v177_v26 }
  0xa4   :  { %vm84_vm1 = vcmp.gt.s32.totalorder %v83_v23, 0  ;;  %v775_v28 = vadd.s32 4294967169, %v181_v25  ;;  %v185_v1 = vor.u32 8388608, %v184_v35 }
  0xa5   :  { %v85_v27 = vsel %vm84_vm1, %v83_v23, 0  ;;  %vm179_vm1 = vcmp.lt.s32.totalorder %v1080_v19, 0 }
  0xa6   :  { %v86_v29 = vshrl.u32 %v85_v27, 5  ;;  %v87_v30 = vand.u32 31, %v85_v27  ;;  %v187_v36 = vadd.s32 1, %v775_v28  ;;  %v225_v17 = vshll.u32 %v185_v1, 8 }
  0xa8   :  { %v88_v32 = vsub.s32 32, %v87_v30  ;;  %v90_v34 = vshll.u32 %v1002_v33, %v87_v30  ;;  %v93_v38 = vshll.u32 %v1003_v37, %v87_v30  ;;  %v96_v40 = vshll.u32 %v1004_v39, %v87_v30 }
  0xa9   :  { %v99_v42 = vshll.u32 %v1005_v41, %v87_v30  ;;  %v102_v44 = vshll.u32 %v1006_v43, %v87_v30  ;;  %vm105_vm2 = vcmp.lt.s32.totalorder %v86_v29, 1  ;;  %vm107_vm3 = vcmp.lt.s32.totalorder %v86_v29, 3 }
  0xaa   :  { %v91_v45 = vshrl.u32 %v1003_v37, %v88_v32  ;;  %v94_v46 = vshrl.u32 %v1004_v39, %v88_v32  ;;  %v97_v47 = vshrl.u32 %v1005_v41, %v88_v32  ;;  %v89_v48 = vshrl.u32 %v1002_v33, %v88_v32 }
  0xab   :  { %v100_v49 = vshrl.u32 %v1006_v43, %v88_v32  ;;  %v103_v51 = vshrl.u32 %v1007_v50, %v88_v32  ;;  %vm188_vm4 = vcmp.gt.s32.totalorder %v187_v36, 0  ;;  %vm108_vm5 = vcmp.lt.s32.totalorder %v86_v29, 4 }
  0xac   :  { %v92_v52 = vor.u32 %v91_v45, %v90_v34  ;;  %v95_v53 = vor.u32 %v94_v46, %v93_v38  ;;  %v98_v54 = vor.u32 %v97_v47, %v96_v40  ;;  %v189_v57 = vsel %vm188_vm4, %v187_v36, 0 }
  0xad   :  { %v101_v55 = vor.u32 %v100_v49, %v99_v42  ;;  %v104_v56 = vor.u32 %v103_v51, %v102_v44  ;;  %vm106_vm6 = vcmp.lt.s32.totalorder %v86_v29, 2  ;;  %v191_v5 = vand.u32 31, %v189_v57 }
  0xae   :  { %v109_v58 = vsel %vm105_vm2, %v89_v48, %v92_v52  ;;  %v110_v59 = vsel %vm108_vm5, %v98_v54, 2102212464  ;;  %v113_v60 = vsel %vm105_vm2, %v92_v52, %v95_v53  ;;  %v117_v61 = vsel %vm105_vm2, %v95_v53, %v98_v54 }
  0xaf   :  { %v111_v62 = vsel %vm107_vm3, %v95_v53, %v110_v59  ;;  %v114_v63 = vsel %vm108_vm5, %v101_v55, 920167782  ;;  %v118_v0 = vsel %vm108_vm5, %v104_v56, 1326507024  ;;  %v190_v13 = vshrl.u32 %v189_v57, 5 }
  0xb0   :  { %v115_v2 = vsel %vm107_vm3, %v98_v54, %v114_v63  ;;  %v119_v3 = vsel %vm107_vm3, %v101_v55, %v118_v0  ;;  %v112_v6 = vsel %vm106_vm6, %v109_v58, %v111_v62  ;;  %v192_v16 = vsub.s32 32, %v191_v5 }
  0xb1   :  { %v116_v7 = vsel %vm106_vm6, %v113_v60, %v115_v2  ;;  %v120_v8 = vsel %vm106_vm6, %v117_v61, %v119_v3  ;;  %v128_v18 = vmul.u32 %v1086_v31, %v112_v6  ;;  %v194_v20 = vshll.u32 %v1002_v33, %v191_v5 }
  0xb2   :  { %v1099_v9 = vmul.u32.u64.low %v1086_v31, %v120_v8  ;;  %v1100_v10 = vmul.u32.u64.high %v1086_v31, %v120_v8, %v1099_v9  ;;  %v1103_v11 = vmul.u32.u64.low %v1086_v31, %v116_v7  ;;  %v1104_v12 = vmul.u32.u64.high %v1086_v31, %v116_v7, %v1103_v11 }
  0xb3   :  { %v197_v21 = vshll.u32 %v1003_v37, %v191_v5  ;;  %v200_v22 = vshll.u32 %v1004_v39, %v191_v5  ;;  %v195_v23 = vshrl.u32 %v1003_v37, %v192_v16  ;;  %v198_v24 = vshrl.u32 %v1004_v39, %v192_v16 }
  0xb4   :  { %v201_v25 = vshrl.u32 %v1005_v41, %v192_v16  ;;  %v203_v27 = vshll.u32 %v1005_v41, %v191_v5  ;;  %vm130_vm7 = vc.u32 %v1100_v10, %v1103_v11  ;;  %v131_v28 = vadd.s32 1, %v1104_v12 }
  0xb5   :  { %v204_v29 = vshrl.u32 %v1006_v43, %v192_v16  ;;  %v206_v30 = vshll.u32 %v1006_v43, %v191_v5  ;;  %v196_v32 = vor.u32 %v195_v23, %v194_v20  ;;  %v199_v34 = vor.u32 %v198_v24, %v197_v21 }
  0xb6   :  { %v202_v35 = vor.u32 %v201_v25, %v200_v22  ;;  %v207_v36 = vshrl.u32 %v1007_v50, %v192_v16  ;;  %v132_v31 = vsel %vm130_vm7, %v131_v28, %v1104_v12  ;;  %vm209_vm8 = vcmp.lt.s32.totalorder %v190_v13, 1 }
  0xb7   :  { %v205_v38 = vor.u32 %v204_v29, %v203_v27  ;;  %vm212_vm9 = vcmp.lt.s32.totalorder %v190_v13, 4  ;;  %v133_v37 = vadd.s32 %v132_v31, %v128_v18  ;;  %vm211_vm10 = vcmp.lt.s32.totalorder %v190_v13, 3 }
  0xb8   :  { %v208_v39 = vor.u32 %v207_v36, %v206_v30  ;;  %v214_v40 = vsel %vm212_vm9, %v202_v35, 2102212464  ;;  %v193_v41 = vshrl.u32 %v1002_v33, %v192_v16  ;;  %v217_v42 = vsel %vm209_vm8, %v196_v32, %v199_v34 }
  0xb9   :  { %v218_v44 = vsel %vm212_vm9, %v205_v38, 920167782  ;;  %v221_v45 = vsel %vm209_vm8, %v199_v34, %v202_v35  ;;  %v134_v46 = vadd.s32 536870912, %v133_v37  ;;  %vm210_vm11 = vcmp.lt.s32.totalorder %v190_v13, 2 }
  0xba   :  { %v219_v43 = vsel %vm211_vm10, %v202_v35, %v218_v44  ;;  %v222_v47 = vsel %vm212_vm9, %v208_v39, 1326507024  ;;  %v213_v48 = vsel %vm209_vm8, %v193_v41, %v196_v32  ;;  %v215_v49 = vsel %vm211_vm10, %v199_v34, %v214_v40 }
  0xbb   :  { %v220_v50 = vsel %vm210_vm11, %v217_v42, %v219_v43  ;;  %v223_v51 = vsel %vm211_vm10, %v205_v38, %v222_v47  ;;  %v135_v52 = vshrl.u32 %v134_v46, 30  ;;  %v216_v58 = vsel %vm210_vm11, %v213_v48, %v215_v49 }
  0xbc   :  { %v224_v53 = vsel %vm210_vm11, %v221_v45, %v223_v51  ;;  %v1114_v54 = vmul.u32.u64.low %v225_v17, %v220_v50  ;;  %v1115_v55 = vmul.u32.u64.high %v225_v17, %v220_v50, %v1114_v54  ;;  %v232_v61 = vmul.u32 %v225_v17, %v216_v58 }
  0xbd   :  { %v1117_v56 = vmul.u32.u64.low %v225_v17, %v224_v53  ;;  %v1118_v57 = vmul.u32.u64.high %v225_v17, %v224_v53, %v1117_v56  ;;  %v136_v33 = vshll.u32 %v135_v52, 30  ;;  %v129_v12 = vadd.s32 %v1103_v11, %v1100_v10 }
  0xbe   :  { %v235_v60 = vadd.s32 1, %v1115_v55  ;;  %v159_v44 = vsub.s32 4, %v135_v52  ;;  %vm178_vm2 = vcmp.le.f32.partialorder %v177_v26, 0.7853982  ;;  %vm165_vm9 = vweird.f32 %v1076_v14 }
  0xbf   :  { %v137_v59 = vsub.s32 %v133_v37, %v136_v33  ;;  %vm234_vm12 = vc.u32 %v1118_v57, %v1114_v54  ;;  %v233_v35 = vadd.s32 %v1114_v54, %v1118_v57  ;;  %v281_v54 = vlaneseq }
  0xc0   :  { %v236_v63 = vsel %vm234_vm12, %v235_v60, %v1115_v55  ;;  %v160_v47 = vsel %vm75_vm15, %v159_v44, %v135_v52  ;;  %vm269_vm10 = vweird.f32 %v1080_v19  ;;  %v911_v44 = vld [vmem:[#allocation5 + $0x8] sm:$0xff]  }
  0xc1   :  { %v139_v62 = vsub.s32 0, %v137_v59  ;;  %v237_v0 = vadd.s32 %v236_v63, %v232_v61  ;;  %v162_v50 = vsel %vm74_vm0, 0, %v160_v47  ;;  %v282_v52 = vshrl.u32 %v281_v54, 7 }
  0xc2   :  { %v166_v55 = vadd.s32 3, %v162_v50  ;;  %v381_v61 = vand.u32 3, %v162_v50 }
  0xc3   :  { %v772_v1 = vmin.u32 %v139_v62, %v137_v59  ;;  %v238_v2 = vadd.s32 536870912, %v237_v0 }
  0xc4   :  { %v167_v60 = vand.u32 3, %v166_v55  ;;  %vm383_vm5 = vcmp.eq.s32.totalorder %v381_v61, 0  ;;  %vm386_vm6 = vcmp.eq.s32.totalorder %v381_v61, 2  ;;  %vm382_vm8 = vcmp.lt.s32.totalorder %v381_v61, 2  ;;  %v798_v61 = vld [vmem:[%s1167_s5] ss:$0 sm:$0xff] }
  0xc5   :  { %v141_v3 = vclz %v772_v1  ;;  %v239_v5 = vshrl.u32 %v238_v2, 30 }
  0xc6   :  { %vm169_vm3 = vcmp.eq.s32.totalorder %v167_v60, 0  ;;  %vm172_vm4 = vcmp.eq.s32.totalorder %v167_v60, 2  ;;  %vm168_vm7 = vcmp.lt.s32.totalorder %v167_v60, 2 }
  0xc7   :  { %v773_v6 = vadd.s32 4294967294, %v141_v3  ;;  %v240_v7 = vshll.u32 %v239_v5, 30  ;;  %v263_v51 = vsub.s32 4, %v239_v5 }
  0xc9   :  { %vm774_vm13 = vcmp.lt.s32.totalorder %v773_v6, 0  ;;  %v241_v9 = vsub.s32 %v237_v0, %v240_v7  ;;  %v264_v56 = vsel %vm179_vm1, %v263_v51, %v239_v5  ;;  %v283_v0 = vsub.s32 0, %v282_v52 }
  0xca   :  { %v144_v8 = vsel %vm774_vm13, 0, %v773_v6  ;;  %v266_v58 = vsel %vm178_vm2, 0, %v264_v56 }
  0xcb   :  { %v145_v13 = vsub.s32 32, %v144_v8  ;;  %v149_v16 = vsub.s32 4294967266, %v144_v8  ;;  %v243_v17 = vsub.s32 0, %v241_v9  ;;  %v146_v18 = vshll.u32 %v137_v59, %v144_v8  ;;  %v54_v59 = vld [vmem:[%s1163_s1 + $0x1] sm:$0x1] }
  0xcc   :  { %v270_v63 = vadd.s32 3, %v266_v58  ;;  %v287_v1 = vsub.f32 1.0, %v54_v59  ;;  %v484_v7 = vand.u32 3, %v266_v58 }
  0xcd   :  { %v147_v20 = vshrl.u32 %v129_v12, %v145_v13  ;;  %v150_v21 = vadd.s32 127, %v149_v16  ;;  %v776_v22 = vmin.u32 %v243_v17, %v241_v9  ;;  %v284_v16 = vrot.slane %v54_v59, %v283_v0 }
  0xce   :  { %v271_v8 = vand.u32 3, %v270_v63  ;;  %v497_v17 = vrot.slane %v287_v1, %v283_v0  ;;  %vm489_vm11 = vcmp.eq.s32.totalorder %v484_v7, 2 }
  0xcf   :  { %v148_v23 = vor.u32 %v147_v20, %v146_v18  ;;  %v151_v24 = vshll.u32 %v150_v21, 23  ;;  %v245_v25 = vclz %v776_v22 }
  0xd0   :  { %vm276_vm12 = vcmp.eq.s32.totalorder %v271_v8, 2  ;;  %vm273_vm13 = vcmp.eq.s32.totalorder %v271_v8, 0 }
  0xd1   :  { %v152_v27 = vor.u32 4788187, %v151_v24  ;;  %v777_v28 = vadd.s32 4294967294, %v245_v25  ;;  %v155_v30 = vcvt.s32.f32 %v148_v23 }
  0xd3   :  { %v153_v29 = vand.u32 2147483647, %v152_v27  ;;  %vm778_vm14 = vcmp.lt.s32.totalorder %v777_v28, 0 }
  0xd4   :  { %v248_v34 = vsel %vm778_vm14, 0, %v777_v28  ;;  %vm486_vm14 = vcmp.eq.s32.totalorder %v484_v7, 0 }
  0xd5   :  { %v156_v32 = vmul.f32 %v155_v30, %v153_v29  ;;  %v249_v10 = vsub.s32 32, %v248_v34  ;;  %v253_v11 = vsub.s32 4294967266, %v248_v34  ;;  %v250_v31 = vshll.u32 %v241_v9, %v248_v34 }
  0xd7   :  { %v157_v36 = vxor.u32 2147483648, %v156_v32  ;;  %v251_v38 = vshrl.u32 %v233_v35, %v249_v10  ;;  %v254_v37 = vadd.s32 127, %v253_v11 }
  0xd9   :  { %v158_v39 = vsel %vm75_vm15, %v157_v36, %v156_v32  ;;  %v252_v41 = vor.u32 %v251_v38, %v250_v31  ;;  %v255_v42 = vshll.u32 %v254_v37, 23  ;;  %vm272_vm15 = vcmp.lt.s32.totalorder %v271_v8, 2  ;;  %v905_v37 = vld [vmem:[#allocation5 + $0x38] sm:$0xff]  }
  0xda   :  { %v161_v40 = vsel %vm74_vm0, %v1076_v14, %v158_v39  ;;  %vm485_vm0 = vcmp.lt.s32.totalorder %v484_v7, 2  ;;  %855 = vmatpush3.bf16.msra.mxu1 %v905_v37  ;;  %v906_v39 = vld [vmem:[#allocation5 + $0x30] sm:$0xff]  }
  0xdb   :  { %913 = vcosq.f32 %v161_v40  ;;  %v256_v45 = vor.u32 4788187, %v255_v42  ;;  %v259_v43 = vcvt.s32.f32 %v252_v41  ;;  %856 = vmatprep.subr.bf16.mxu1 %v1000_v4  ;;  %v909_v41 = vld [vmem:[#allocation5 + $0x18] sm:$0xff]   ;;  %v910_v42 = vld [vmem:[#allocation5 + $0x10] sm:$0xff]  }
  0xdc   :  { %915 = vsinq.f32 %v161_v40  ;;  %v907_v40 = vld [vmem:[#allocation5 + $0x28] sm:$0xff]  }
  0xdd   :  { %v257_v46 = vand.u32 2147483647, %v256_v45  ;;  %v912_v45 = vld [vmem:[#allocation5] sm:$0xff]  }
  0xde   :  { %857 = vmatpush3.bf16.msra.mxu1 %v906_v39 }
  0xdf   :  { %v260_v48 = vmul.f32 %v259_v43, %v257_v46  ;;  %858 = vmatprep.subr.bf16.mxu1 %v1000_v4  ;;  %v787_v46 = vld [vmem:[%s1165_s3] ss:$0 sm:$0xff] }
  0xe1   :  { %v261_v49 = vxor.u32 2147483648, %v260_v48 }
  0xe2   :  { %859 = vmatpush3.bf16.msra.mxu1 %v907_v40 }
  0xe3   :  { %v262_v15 = vsel %vm179_vm1, %v261_v49, %v260_v48  ;;  %860 = vmatprep.subr.bf16.mxu1 %v1000_v4 }
  0xe4   :  { %v265_v53 = vsel %vm178_vm2, %v1080_v19, %v262_v15  ;;  %v908_v19 = vld [vmem:[#allocation5 + $0x20] sm:$0xff]  }
  0xe5   :  { %917 = vcosq.f32 %v265_v53 }
  0xe6   :  { %919 = vsinq.f32 %v265_v53  ;;  %861 = vmatpush3.bf16.msra.mxu1 %v908_v19 }
  0xe7   :  { %862 = vmatprep.subr.bf16.mxu1 %v1000_v4 }
  0xe8   :  { %v914_v57 = vpop.eup %913 }
  0xe9   :  { %v916_v33 = vpop.eup %915  ;;  %v173_v26 = vxor.u32 2147483648, %v914_v57 }
  0xea   :  { %v170_v62 = vxor.u32 2147483648, %v916_v33  ;;  %863 = vmatpush3.bf16.msra.mxu1 %v909_v41 }
  0xeb   :  { %v174_v3 = vsel %vm172_vm4, %v173_v26, %v916_v33  ;;  %v388_v6 = vsel %vm386_vm6, %v173_v26, %v916_v33  ;;  %864 = vmatprep.subr.bf16.mxu1 %v1000_v4 }
  0xec   :  { %v171_v2 = vsel %vm169_vm3, %v914_v57, %v170_v62  ;;  %v385_v5 = vsel %vm383_vm5, %v914_v57, %v170_v62 }
  0xed   :  { %v175_v9 = vsel %vm168_vm7, %v171_v2, %v174_v3  ;;  %v389_v12 = vsel %vm382_vm8, %v385_v5, %v388_v6 }
  0xee   :  { %v176_v21 = vsel %vm165_vm9, nan, %v175_v9  ;;  %v390_v23 = vsel %vm165_vm9, nan, %v389_v12  ;;  %865 = vmatpush3.bf16.msra.mxu1 %v910_v42 }
  0xef   :  { %v285_v30 = vmul.f32 %v284_v16, %v176_v21  ;;  %v498_v14 = vmul.f32 %v497_v17, %v390_v23  ;;  %866 = vmatprep.subr.bf16.mxu1 %v1000_v4 }
  0xf1   :  { %v500_v36 = vadd.f32 %v498_v14, %v285_v30 }
  0xf2   :  { %v918_v13 = vpop.eup %917  ;;  %867 = vmatpush3.bf16.msra.mxu1 %v911_v44 }
  0xf3   :  { %v920_v18 = vpop.eup %919  ;;  %v277_v20 = vxor.u32 2147483648, %v918_v13  ;;  %868 = vmatprep.subr.bf16.mxu1 %v1000_v4 }
  0xf4   :  { %v274_v22 = vxor.u32 2147483648, %v920_v18 }
  0xf5   :  { %v278_v24 = vsel %vm276_vm12, %v277_v20, %v920_v18  ;;  %v491_v25 = vsel %vm489_vm11, %v277_v20, %v920_v18 }
  0xf6   :  { %v275_v27 = vsel %vm273_vm13, %v918_v13, %v274_v22  ;;  %v488_v28 = vsel %vm486_vm14, %v918_v13, %v274_v22  ;;  %869 = vmatpush3.bf16.msra.mxu1 %v912_v45 }
  0xf7   :  { %v279_v29 = vsel %vm272_vm15, %v275_v27, %v278_v24  ;;  %v492_v32 = vsel %vm485_vm0, %v488_v28, %v491_v25 }
  0xf8   :  { %v280_v34 = vsel %vm269_vm10, nan, %v279_v29  ;;  %v493_v35 = vsel %vm269_vm10, nan, %v492_v32 }
  0xf9   :  { %v286_v10 = vmul.f32 %v284_v16, %v280_v34  ;;  %v499_v11 = vmul.f32 %v497_v17, %v493_v35 }
  0xfb   :  { %v501_v31 = vadd.f32 %v499_v11, %v286_v10 }
  0xfd   :  { %v502_v38 = vpack.c.bf16 %v501_v31, %v500_v36 }
  0xff   :  { %851 = vmatmul.mubr.bf16.vlgmr.msra.gmra.mxu0 %v502_v38 }
 0x1bf   :  { %v608_v43 = vpop.f32.mrf.mxu0 }
 0x1c0   :  { %v609_v47 = vadd.f32 %v787_v46, %v608_v43 }
 0x1c1   :  { %v852_v48 = vpop.f32.mrf.mxu0 }
 0x1c2   :  { %v796_v49 = vmul.f32 -1.442695, %v609_v47 }
 0x1c3   :  { %v611_v50 = vpop.f32.mrf.mxu0 }
 0x1c4   :  { %921 = vpow2.f32 %v796_v49  ;;  %v612_v51 = vadd.f32 %v787_v46, %v611_v50 }
 0x1c5   :  { %v853_v15 = vpop.f32.mrf.mxu0 }
 0x1c6   :  { %v797_v53 = vmul.f32 -1.442695, %v612_v51 }
 0x1c8   :  { %923 = vpow2.f32 %v797_v53 }
 0x1d1   :  { %v922_v54 = vpop.eup %921 }
 0x1d2   :  { %v621_v55 = vadd.f32 1.0, %v922_v54 }
 0x1d4   :  { %925 = vrcp.f32 %v621_v55 }
 0x1d5   :  { %v924_v56 = vpop.eup %923 }
 0x1d6   :  { %v622_v4 = vadd.f32 1.0, %v924_v56 }
 0x1d8   :  { %927 = vrcp.f32 %v622_v4 }
 0x1e1   :  { %v926_v57 = vpop.eup %925 }
 0x1e2   :  { %v627_v52 = vmul.f32 %v926_v57, %v609_v47 }
 0x1e5   :  { %v928_v33 = vpop.eup %927 }
 0x1e6   :  { %v628_v58 = vmul.f32 %v928_v33, %v612_v51 }
 0x1e8   :  { %v629_v59 = vpack.c.bf16 %v628_v58, %v627_v52 }
 0x1ea   :  { %871 = vmatmul.mubr.bf16.vlgmr.msra.gmra.mxu1 %v629_v59 }
 0x2aa   :  { %v735_v60 = vpop.f32.mrf.mxu1 }
 0x2ab   :  { %v736_v63 = vadd.f32 %v798_v61, %v735_v60 }
 0x2ac   :  { %v872_v62 = vpop.f32.mrf.mxu1 }
 0x2ae   :  { %v738_v26 = vpop.f32.mrf.mxu1 }
 0x2af   :  { %v739_v0 = vadd.f32 %v798_v61, %v738_v26 }
 0x2b0   :  { %v873_v1 = vpop.f32.mrf.mxu1 }
 0x2b1   :  { %v814_v2 = vpack.c.bf16 %v739_v0, %v736_v63 }
 0x2b3   :  { %815 = vst [vmem:[#allocation7] sm:$0xff] %v814_v2  }
 0x2b4   :  { %980 = shalt.err (!%p977_p0)
}
 0x2b5   :  { %763 = dma.vmem_to_hbm [thread:$0]  %s758_s17, 128, %s1168_s6, [#allocation4], %s996_s24, %s996_s24, %s997_s25  }
 0x2b6   :  { %993 = dma.done.wait [#allocation4], 128  }
 0x2b7   :  { %994 = vsyncadd [#allocation4], 4294967168 }
 0x2b8   :  { %767 = vsyncpa [#allocation3], 1 }
 0x2b9   :  { %768 = vsyncpa [#allocation6], 1 }
 0x2ba   :  { %769 = vsyncpa [#allocation4], 1 }

</bundles_post_ra>
